<compile_context>
chip_gen: v7x
topology: tpu7x:2x2x1
jax: 0.10.0
libtpu: 0.0.40
codegen_flags: <defaults>
</compile_context>

<pallas_src>
import functools

import jax
import jax.numpy as jnp
from jax.experimental import pallas as pl
from jax.experimental.pallas import tpu as pltpu

_LANE = 128          # TPU lane width; pad feature dims to multiples of this.
_BATCH_TILE = 512    # rows per grid step on the batch-tiled path.


def _round_up(n, m):
    return ((n + m - 1) // m) * m


def qnet_kernel(x_ref, w1_ref, w2_ref, w3_ref, b_ref, o_ref):
    """Fused 3-layer MLP; all operands for this tile are VMEM-resident."""
    d1 = w1_ref.shape[1]
    d2 = w2_ref.shape[1]
    d3 = w3_ref.shape[1]

    x = x_ref[...]
    h1 = jnp.dot(x, w1_ref[...], preferred_element_type=jnp.float32)
    h1 = jnp.maximum(h1 + b_ref[0:1, :d1], 0.0)
    h2 = jnp.dot(h1, w2_ref[...], preferred_element_type=jnp.float32)
    h2 = jnp.maximum(h2 + b_ref[1:2, :d2], 0.0)
    o_ref[...] = (
        jnp.dot(h2, w3_ref[...], preferred_element_type=jnp.float32) + b_ref[2:3, :d3]
    )


def pack_params(params):
    """Zero-pad lane dims to multiples of 128 and stack biases (do this ONCE per weights).

    Returns (w1p, w2p, w3p, bias_stack) — 4 weight-side operands instead of 6.
    Zero padding is exact: ReLU(0 + 0) = 0 and zero weight rows contribute nothing.
    """
    w1, b1, w2, b2, w3, b3 = params
    h1, h2, na = w1.shape[1], w2.shape[1], w3.shape[1]
    h1p = _round_up(h1, _LANE)
    h2p = _round_up(h2, _LANE)
    nap = _round_up(na, _LANE)
    bl = max(h1p, h2p, nap)

    w1p = jnp.pad(w1, ((0, 0), (0, h1p - h1)))
    w2p = jnp.pad(w2, ((0, h1p - h1), (0, h2p - h2)))
    w3p = jnp.pad(w3, ((0, h2p - h2), (0, nap - na)))
    bias_stack = jnp.stack(
        [
            jnp.pad(b1, (0, bl - h1)),
            jnp.pad(b2, (0, bl - h2)),
            jnp.pad(b3, (0, bl - na)),
        ]
    )
    return w1p, w2p, w3p, bias_stack


def qnetwork_forward(x, packed_params, n_actions):
    """x: (B, obs_dim) f32; packed_params from pack_params(). Returns (B, n_actions)."""
    w1p, w2p, w3p, bstack = packed_params
    batch, obs_dim = x.shape
    out_pad = w3p.shape[1]

    if batch <= _BATCH_TILE:
        # Gridless path: one kernel invocation, every operand a whole-array VMEM block.
        vmem_spec = functools.partial(
            pl.BlockSpec, memory_space=pltpu.MemorySpace.VMEM
        )
        out_padded = pl.pallas_call(
            qnet_kernel,
            out_shape=jax.ShapeDtypeStruct((batch, out_pad), jnp.float32),
            in_specs=[vmem_spec(), vmem_spec(), vmem_spec(), vmem_spec(), vmem_spec()],
            out_specs=vmem_spec(),
        )(x, w1p, w2p, w3p, bstack)
    else:
        # Batch-tiled path: weights/biases stay resident across the grid; batch axis
        # is "parallel" so v7x megacore can split it across TensorCores.
        tb = _BATCH_TILE
        bpad = _round_up(batch, tb)
        if bpad != batch:
            x = jnp.pad(x, ((0, bpad - batch), (0, 0)))
        out_padded = pl.pallas_call(
            qnet_kernel,
            out_shape=jax.ShapeDtypeStruct((bpad, out_pad), jnp.float32),
            grid=(bpad // tb,),
            in_specs=[
                pl.BlockSpec((tb, obs_dim), lambda i: (i, 0)),
                pl.BlockSpec(w1p.shape, lambda i: (0, 0)),
                pl.BlockSpec(w2p.shape, lambda i: (0, 0)),
                pl.BlockSpec(w3p.shape, lambda i: (0, 0)),
                pl.BlockSpec(bstack.shape, lambda i: (0, 0)),
            ],
            out_specs=pl.BlockSpec((tb, out_pad), lambda i: (i, 0)),
            compiler_params=pltpu.CompilerParams(
                dimension_semantics=("parallel",)
            ),
        )(x, w1p, w2p, w3p, bstack)
        out_padded = out_padded[:batch]

    return out_padded[:, :n_actions]


def init_params(key, obs_dim, n_actions):
    # Deterministic init mimicking torch.nn.Linear default (uniform +/- 1/sqrt(fan_in)).
    # Weights stored (in_features, out_features) so x @ W + b == PyTorch x @ W.T + b.
    dims = [(obs_dim, 120), (120, 84), (84, n_actions)]
    params = []
    for fan_in, fan_out in dims:
        key, kw, kb = jax.random.split(key, 3)
        bound = 1.0 / jnp.sqrt(jnp.float32(fan_in))
        w = jax.random.uniform(
            kw, (fan_in, fan_out), jnp.float32, minval=-bound, maxval=bound
        )
        b = jax.random.uniform(
            kb, (fan_out,), jnp.float32, minval=-bound, maxval=bound
        )
        params.extend([w, b])
    return tuple(params)


def _reference(x, params):
    w1, b1, w2, b2, w3, b3 = params
    h = jnp.maximum(x @ w1 + b1, 0.0)
    h = jnp.maximum(h @ w2 + b2, 0.0)
    return h @ w3 + b3


if __name__ == "__main__":
    key = jax.random.PRNGKey(0)
    batch, obs_dim, n_actions = 2, 8, 4

    key, kx = jax.random.split(key)
    x = jax.random.normal(kx, (batch, obs_dim), jnp.float32)
    params = init_params(key, obs_dim, n_actions)
    packed = pack_params(params)  # pad/stack once; reuse across calls.

    # Small-batch (gridless) path.
    out = qnetwork_forward(x, packed, n_actions)
    jax.block_until_ready(out)
    ref = _reference(x, params)
    assert out.shape == (batch, n_actions)
    assert jnp.allclose(out, ref, atol=1e-5, rtol=1e-5)

    # Large-batch (batch-tiled, weights-resident) path; still tiny data (~32 KB).
    key, kx2 = jax.random.split(key)
    big_batch = 1031  # deliberately not a multiple of the batch tile
    xb = jax.random.normal(kx2, (big_batch, obs_dim), jnp.float32)
    outb = qnetwork_forward(xb, packed, n_actions)
    jax.block_until_ready(outb)
    refb = _reference(xb, params)
    assert outb.shape == (big_batch, n_actions)
    assert jnp.allclose(outb, refb, atol=1e-4, rtol=1e-4)

    print("KERNEL_OK")
</pallas_src>

<mosaic_0001>
module attributes {stable_mosaic.version = 11 : i64} {
  func.func @qnet_kernel(%arg0: memref<2x8xf32, #tpu.memory_space<vmem>>, %arg1: memref<8x128xf32, #tpu.memory_space<vmem>>, %arg2: memref<128x128xf32, #tpu.memory_space<vmem>>, %arg3: memref<128x128xf32, #tpu.memory_space<vmem>>, %arg4: memref<3x128xf32, #tpu.memory_space<vmem>>, %arg5: memref<2x128xf32, #tpu.memory_space<vmem>>) attributes {dimension_semantics = [], scalar_prefetch = 0 : i64, scratch_operands = 0 : i64, tpu.core_type = #tpu.core_type<tc>} {
    %c0 = arith.constant 0 : index
    %c0_0 = arith.constant 0 : index
    %0 = vector.load %arg0[%c0, %c0_0] : memref<2x8xf32, #tpu.memory_space<vmem>>, vector<2x8xf32>
    %c0_1 = arith.constant 0 : index
    %c0_2 = arith.constant 0 : index
    %1 = vector.load %arg1[%c0_1, %c0_2] : memref<8x128xf32, #tpu.memory_space<vmem>>, vector<8x128xf32>
    %cst = arith.constant dense<0.000000e+00> : vector<2x128xf32>
    %2 = tpu.matmul %0, %1, %cst {dimension_numbers = #tpu.dot_dimension_numbers<[1], [0], [0], [1], [0, 0, 1, 1], [], []>} : vector<2x8xf32>, vector<8x128xf32>, vector<2x128xf32> -> vector<2x128xf32>
    %c0_3 = arith.constant 0 : index
    %c0_4 = arith.constant 0 : index
    %3 = vector.load %arg4[%c0_3, %c0_4] : memref<3x128xf32, #tpu.memory_space<vmem>>, vector<1x128xf32>
    %4 = vector.broadcast %3 : vector<1x128xf32> to vector<2x128xf32>
    %5 = arith.addf %2, %4 : vector<2x128xf32>
    %cst_5 = arith.constant 0.000000e+00 : f32
    %6 = vector.broadcast %cst_5 : f32 to vector<2x128xf32>
    %7 = arith.maximumf %5, %6 : vector<2x128xf32>
    %c0_6 = arith.constant 0 : index
    %c0_7 = arith.constant 0 : index
    %8 = vector.load %arg2[%c0_6, %c0_7] : memref<128x128xf32, #tpu.memory_space<vmem>>, vector<128x128xf32>
    %cst_8 = arith.constant dense<0.000000e+00> : vector<2x128xf32>
    %9 = tpu.matmul %7, %8, %cst_8 {dimension_numbers = #tpu.dot_dimension_numbers<[1], [0], [0], [1], [0, 0, 1, 1], [], []>} : vector<2x128xf32>, vector<128x128xf32>, vector<2x128xf32> -> vector<2x128xf32>
    %c1 = arith.constant 1 : index
    %c0_9 = arith.constant 0 : index
    %10 = vector.load %arg4[%c1, %c0_9] : memref<3x128xf32, #tpu.memory_space<vmem>>, vector<1x128xf32>
    %11 = vector.broadcast %10 : vector<1x128xf32> to vector<2x128xf32>
    %12 = arith.addf %9, %11 : vector<2x128xf32>
    %cst_10 = arith.constant 0.000000e+00 : f32
    %13 = vector.broadcast %cst_10 : f32 to vector<2x128xf32>
    %14 = arith.maximumf %12, %13 : vector<2x128xf32>
    %c0_11 = arith.constant 0 : index
    %c0_12 = arith.constant 0 : index
    %15 = vector.load %arg3[%c0_11, %c0_12] : memref<128x128xf32, #tpu.memory_space<vmem>>, vector<128x128xf32>
    %cst_13 = arith.constant dense<0.000000e+00> : vector<2x128xf32>
    %16 = tpu.matmul %14, %15, %cst_13 {dimension_numbers = #tpu.dot_dimension_numbers<[1], [0], [0], [1], [0, 0, 1, 1], [], []>} : vector<2x128xf32>, vector<128x128xf32>, vector<2x128xf32> -> vector<2x128xf32>
    %c2 = arith.constant 2 : index
    %c0_14 = arith.constant 0 : index
    %17 = vector.load %arg4[%c2, %c0_14] : memref<3x128xf32, #tpu.memory_space<vmem>>, vector<1x128xf32>
    %18 = vector.broadcast %17 : vector<1x128xf32> to vector<2x128xf32>
    %19 = arith.addf %16, %18 : vector<2x128xf32>
    %c0_15 = arith.constant 0 : index
    %c0_16 = arith.constant 0 : index
    %20 = vector.load %arg5[%c0_15, %c0_16] : memref<2x128xf32, #tpu.memory_space<vmem>>, vector<2x128xf32>
    tpu.vector_store %arg5[%c0_15, %c0_16], %19 {strides = array<i32>} : memref<2x128xf32, #tpu.memory_space<vmem>>, vector<2x128xf32>,
    return
  }
}

</mosaic_0001>

<bundles_post_ra>
// kernel: tpu_custom_call.1
= control target key start
LH: loop header
LB: loop body
LE: loop exit
PB: predicated region body
PF: predicated region fallthrough
CT: control target
= control target key end

     0   :  { %10 = vsyncpa [#allocation3], 0  ;;  %s774_s0 = inlined_call_operand.hbm [shape: f32[2,8], index: 0, kind: input, shape index: {}]   ;;  %s775_s1 = inlined_call_operand.hbm [shape: f32[8,128], index: 1, kind: input, shape index: {}]   ;;  %s776_s2 = inlined_call_operand.hbm [shape: f32[128,128], index: 2, kind: input, shape index: {}]   ;;  %s777_s3 = inlined_call_operand.hbm [shape: f32[128,128], index: 3, kind: input, shape index: {}]   ;;  %s778_s4 = inlined_call_operand.vmem [shape: f32[3,128], index: 4, kind: input, shape index: {}]   ;;  %s779_s5 = inlined_call_operand.hbm [shape: f32[2,128], index: 5, kind: output, shape index: {}]  }
   0x1   :  { %11 = vsyncpa [#allocation6], 0 }
   0x2   :  { %12 = vsyncpa [#allocation9], 0 }
   0x3   :  { %13 = vsyncpa [#allocation4], 0  ;;  %s646_s18 = smov [#allocation5]   ;;  %s647_s20 = smov [#allocation2]  }
   0x4   :  { %s30_s19 = sshll.u32 %s646_s18, 4  ;;  %s20_s21 = sshll.u32 %s647_s20, 4  ;;  %s31_s19 = int_to_ptr.vmem [resolvable:$true] %s30_s19  ;;  %s21_s21 = int_to_ptr.vmem [resolvable:$true] %s20_s21 }
   0x5   :  { %s528_s24 = scalar_lea.hbm %s775_s1, 128 }
   0x6   :  { %p529_p0 = scmp.ne.s32.totalorder %s775_s1, %s528_s24  ;;  %p532_p1 = scmp.lt.u32.totalorder %s528_s24, %s775_s1 }
   0x8   :  { %p534_p2 = pnand %p532_p1, %p529_p0 }
   0xa   :  { %537 = shalt.err (!%p534_p2)
}
   0xb   :  { %s538_s29 = scalar_lea.vmem %s31_s19, 128  ;;  %p543_p4 = scmp.lt.s32.totalorder %s31_s19, %s31_s19 }
   0xc   :  { %p539_p3 = scmp.ne.s32.totalorder %s31_s19, %s538_s29  ;;  %p544_p5 = scmp.lt.s32.totalorder %s538_s29, %s538_s29 }
   0xe   :  { %p545_p6 = por %p544_p5, %p543_p4 }
  0x10   :  { %p546_p7 = pnand %p545_p6, %p539_p3 }
  0x12   :  { %549 = shalt.err (!%p546_p7)
}
  0x13   :  { %33 = dma.hbm_to_vmem [thread:$0]  %s775_s1, 128, %s31_s19, [#allocation6]  }
  0x14   :  { %s550_s9 = scalar_lea.hbm %s774_s0, 32 }
  0x15   :  { %p551_p8 = scmp.ne.s32.totalorder %s774_s0, %s550_s9  ;;  %p554_p9 = scmp.lt.u32.totalorder %s550_s9, %s774_s0 }
  0x17   :  { %p556_p10 = pnand %p554_p9, %p551_p8 }
  0x19   :  { %559 = shalt.err (!%p556_p10)
}
  0x1a   :  { %s560_s14 = scalar_lea.vmem %s21_s21, 32  ;;  %p565_p12 = scmp.lt.s32.totalorder %s21_s21, %s21_s21 }
  0x1b   :  { %p561_p11 = scmp.ne.s32.totalorder %s21_s21, %s560_s14  ;;  %p566_p13 = scmp.lt.s32.totalorder %s560_s14, %s560_s14 }
  0x1d   :  { %p567_p0 = por %p566_p13, %p565_p12 }
  0x1f   :  { %p568_p1 = pnand %p567_p0, %p561_p11 }
  0x21   :  { %571 = shalt.err (!%p568_p1)
}
  0x22   :  { %23 = dma.hbm_to_vmem [thread:$0]  %s774_s0, 32, %s21_s21, [#allocation3]  }
  0x23   :  { %s648_s16 = smov [#allocation7]   ;;  %s572_s20 = scalar_lea.hbm %s776_s2, 2048 }
  0x24   :  { %s39_s17 = sshll.u32 %s648_s16, 4  ;;  %p573_p2 = scmp.ne.s32.totalorder %s776_s2, %s572_s20  ;;  %s40_s17 = int_to_ptr.vmem [resolvable:$true] %s39_s17 }
  0x25   :  { %p576_p3 = scmp.lt.u32.totalorder %s572_s20, %s776_s2 }
  0x27   :  { %p578_p4 = pnand %p576_p3, %p573_p2 }
  0x29   :  { %581 = shalt.err (!%p578_p4)
}
  0x2a   :  { %s582_s26 = scalar_lea.vmem %s40_s17, 2048  ;;  %p587_p6 = scmp.lt.s32.totalorder %s40_s17, %s40_s17 }
  0x2b   :  { %p583_p5 = scmp.ne.s32.totalorder %s40_s17, %s582_s26  ;;  %p588_p7 = scmp.lt.s32.totalorder %s582_s26, %s582_s26 }
  0x2d   :  { %p589_p8 = por %p588_p7, %p587_p6 }
  0x2f   :  { %p590_p9 = pnand %p589_p8, %p583_p5 }
  0x31   :  { %593 = shalt.err (!%p590_p9)
}
  0x32   :  { %s649_s0 = smov 128   ;;  %s650_s21 = smov 8  }
  0x33   :  { %45 = dma.hbm_to_vmem [thread:$0]  %s776_s2, 2048, %s40_s17, [#allocation6], %s649_s0, %s649_s0, %s650_s21  }
  0x34   :  { %s651_s29 = smov [#allocation8]   ;;  %s594_s8 = scalar_lea.hbm %s777_s3, 2048 }
  0x35   :  { %s51_s30 = sshll.u32 %s651_s29, 4  ;;  %p595_p10 = scmp.ne.s32.totalorder %s777_s3, %s594_s8  ;;  %s52_s30 = int_to_ptr.vmem [resolvable:$true] %s51_s30 }
  0x36   :  { %p598_p11 = scmp.lt.u32.totalorder %s594_s8, %s777_s3 }
  0x38   :  { %p600_p12 = pnand %p598_p11, %p595_p10 }
  0x3a   :  { %603 = shalt.err (!%p600_p12)
}
  0x3b   :  { %s604_s13 = scalar_lea.vmem %s52_s30, 2048  ;;  %p609_p0 = scmp.lt.s32.totalorder %s52_s30, %s52_s30 }
  0x3c   :  { %p605_p13 = scmp.ne.s32.totalorder %s52_s30, %s604_s13  ;;  %p610_p1 = scmp.lt.s32.totalorder %s604_s13, %s604_s13 }
  0x3e   :  { %p611_p2 = por %p610_p1, %p609_p0 }
  0x40   :  { %p612_p3 = pnand %p611_p2, %p605_p13 }
  0x42   :  { %615 = shalt.err (!%p612_p3)
}
  0x43   :  { %57 = dma.hbm_to_vmem [thread:$0]  %s777_s3, 2048, %s52_s30, [#allocation9], %s649_s0, %s649_s0, %s650_s21  }
  0x44   :  { %638 = dma.done.wait [#allocation3], 32  }
  0x45   :  { %639 = vsyncadd [#allocation3], 4294967264 }
  0x46   :  { %640 = dma.done.wait [#allocation6], 2176  }
  0x47   :  { %641 = vsyncadd [#allocation6], 4294965120 }
  0x48   :  { %642 = dma.done.wait [#allocation9], 2048  }
  0x49   :  { %643 = vsyncadd [#allocation9], 4294965248  ;;  %v652_v0 = vmov 0.0   ;;  %vm653_vm0 = vmmov 0   ;;  %v654_v1 = vmov 0.0|0.0   ;;  %vm79_vm1 = vcmask 64512  }
  0x4a   :  { %395 = vmatprep.subr.mxu0 %v652_v0  ;;  %397 = vmatprep.mubr.msk.f32.mxu0 %vm653_vm0, %v652_v0  ;;  %v73_v2 = vld [vmem:[#allocation5] sm:$0xff]  ;;  %v72_v3 = vld [vmem:[#allocation2] sm:$0x3]  ;;  %v154_v4 = vld [vmem:[#allocation7] sm:$0xff]  ;;  %s655_s19 = smov [#allocation10]  }
  0x4b   :  { %470 = vmatprep.subr.bf16.mxu1 %v654_v1  ;;  %432 = vmatprep.mubr.msk.f32.mxu1 %vm653_vm0, %v652_v0  ;;  %v155_v5 = vld [vmem:[#allocation7 + $0x8] sm:$0xff]  ;;  %v156_v6 = vld [vmem:[#allocation7 + $0x10] sm:$0xff]  ;;  %v157_v7 = vld [vmem:[#allocation7 + $0x18] sm:$0xff]  ;;  %s344_s20 = sshll.u32 %s655_s19, 4  ;;  %s345_s20 = int_to_ptr.vmem [resolvable:$true] %s344_s20 }
  0x4c   :  { %396 = vmatpush3.msra.mxu0 %v73_v2  ;;  %v471_v8 = vpack.c.bf16 %v155_v5, %v154_v4  ;;  %v474_v9 = vpack.c.bf16 %v157_v7, %v156_v6  ;;  %v158_v10 = vld [vmem:[#allocation7 + $0x20] sm:$0xff]  ;;  %v159_v11 = vld [vmem:[#allocation7 + $0x28] sm:$0xff]  ;;  %v160_v13 = vld [vmem:[#allocation7 + $0x30] sm:$0xff]  ;;  %s616_s22 = scalar_lea.vmem %s345_s20, 32  ;;  %p621_p5 = scmp.lt.s32.totalorder %s345_s20, %s345_s20 }
  0x4d   :  { %398 = vmatmul.mubr.msk.f32.vlgmr.msra.gmra.mrb[0].mxu0 %vm79_vm1, %v72_v3  ;;  %494 = vmatprep.subr.bf16.mxu0 %v654_v1  ;;  %v477_v12 = vpack.c.bf16 %v159_v11, %v158_v10  ;;  %v161_v14 = vld [vmem:[#allocation7 + $0x38] sm:$0xff]  ;;  %v162_v16 = vld [vmem:[#allocation7 + $0x40] sm:$0xff]  ;;  %v163_v17 = vld [vmem:[#allocation7 + $0x48] sm:$0xff]  ;;  %p617_p4 = scmp.ne.s32.totalorder %s345_s20, %s616_s22  ;;  %p622_p6 = scmp.lt.s32.totalorder %s616_s22, %s616_s22 }
  0x4e   :  { %467 = vmatprep.mubr.msk.f32.mxu0 %vm653_vm0, %v652_v0  ;;  %472 = vmatpush3.bf16.msra.mxu1 %v471_v8  ;;  %v480_v15 = vpack.c.bf16 %v161_v14, %v160_v13  ;;  %v483_v18 = vpack.c.bf16 %v163_v17, %v162_v16  ;;  %v164_v19 = vld [vmem:[#allocation7 + $0x50] sm:$0xff]  ;;  %v165_v20 = vld [vmem:[#allocation7 + $0x58] sm:$0xff]  ;;  %v166_v22 = vld [vmem:[#allocation7 + $0x60] sm:$0xff] }
  0x4f   :  { %473 = vmatprep.subr.bf16.mxu1 %v654_v1  ;;  %v486_v21 = vpack.c.bf16 %v165_v20, %v164_v19  ;;  %v167_v23 = vld [vmem:[#allocation7 + $0x68] sm:$0xff]  ;;  %v168_v25 = vld [vmem:[#allocation7 + $0x70] sm:$0xff]  ;;  %v169_v26 = vld [vmem:[#allocation7 + $0x78] sm:$0xff]  ;;  %p623_p7 = por %p622_p6, %p621_p5 }
  0x50   :  { %v489_v24 = vpack.c.bf16 %v167_v23, %v166_v22  ;;  %v492_v27 = vpack.c.bf16 %v169_v26, %v168_v25  ;;  %v246_v28 = vld [vmem:[#allocation8] sm:$0xff]  ;;  %v247_v29 = vld [vmem:[#allocation8 + $0x8] sm:$0xff]  ;;  %v248_v30 = vld [vmem:[#allocation8 + $0x10] sm:$0xff] }
  0x51   :  { %v495_v31 = vpack.c.bf16 %v247_v29, %v246_v28  ;;  %v249_v32 = vld [vmem:[#allocation8 + $0x18] sm:$0xff]  ;;  %v250_v34 = vld [vmem:[#allocation8 + $0x20] sm:$0xff]  ;;  %v251_v35 = vld [vmem:[#allocation8 + $0x28] sm:$0xff]  ;;  %p624_p8 = pnand %p623_p7, %p617_p4 }
  0x52   :  { %475 = vmatpush3.bf16.msra.mxu1 %v474_v9  ;;  %v498_v33 = vpack.c.bf16 %v249_v32, %v248_v30  ;;  %v501_v36 = vpack.c.bf16 %v251_v35, %v250_v34  ;;  %v252_v37 = vld [vmem:[#allocation8 + $0x30] sm:$0xff]  ;;  %v253_v38 = vld [vmem:[#allocation8 + $0x38] sm:$0xff]  ;;  %v254_v40 = vld [vmem:[#allocation8 + $0x40] sm:$0xff] }
  0x53   :  { %476 = vmatprep.subr.bf16.mxu1 %v654_v1  ;;  %496 = vmatpush3.bf16.msra.mxu0 %v495_v31  ;;  %v504_v39 = vpack.c.bf16 %v253_v38, %v252_v37  ;;  %v255_v41 = vld [vmem:[#allocation8 + $0x48] sm:$0xff]  ;;  %v256_v43 = vld [vmem:[#allocation8 + $0x50] sm:$0xff]  ;;  %v257_v44 = vld [vmem:[#allocation8 + $0x58] sm:$0xff] }
  0x54   :  { %497 = vmatprep.subr.bf16.mxu0 %v654_v1  ;;  %v507_v42 = vpack.c.bf16 %v255_v41, %v254_v40  ;;  %v510_v45 = vpack.c.bf16 %v257_v44, %v256_v43  ;;  %v258_v46 = vld [vmem:[#allocation8 + $0x60] sm:$0xff]  ;;  %v259_v47 = vld [vmem:[#allocation8 + $0x68] sm:$0xff]  ;;  %v260_v54 = vld [vmem:[#allocation8 + $0x70] sm:$0xff] }
  0x55   :  { %v513_v48 = vpack.c.bf16 %v259_v47, %v258_v46  ;;  %v355_v49 = vld [vmem:[%s778_s4] ss:$0 sm:$0xff]  ;;  %v261_v55 = vld [vmem:[#allocation8 + $0x78] sm:$0xff]  ;;  %v357_v57 = vld [vmem:[%s778_s4 + $0x1] ss:$0 sm:$0xff] }
  0x56   :  { %478 = vmatpush3.bf16.msra.mxu1 %v477_v12  ;;  %v516_v56 = vpack.c.bf16 %v261_v55, %v260_v54  ;;  %v358_v62 = vld [vmem:[%s778_s4 + $0x2] ss:$0 sm:$0xff] }
  0x57   :  { %479 = vmatprep.subr.bf16.mxu1 %v654_v1  ;;  %499 = vmatpush3.bf16.msra.mxu0 %v498_v33 }
  0x58   :  { %500 = vmatprep.subr.bf16.mxu0 %v654_v1 }
  0x5a   :  { %481 = vmatpush3.bf16.msra.mxu1 %v480_v15 }
  0x5b   :  { %482 = vmatprep.subr.bf16.mxu1 %v654_v1  ;;  %502 = vmatpush3.bf16.msra.mxu0 %v501_v36 }
  0x5c   :  { %503 = vmatprep.subr.bf16.mxu0 %v654_v1 }
  0x5e   :  { %484 = vmatpush3.bf16.msra.mxu1 %v483_v18 }
  0x5f   :  { %485 = vmatprep.subr.bf16.mxu1 %v654_v1  ;;  %505 = vmatpush3.bf16.msra.mxu0 %v504_v39 }
  0x60   :  { %506 = vmatprep.subr.bf16.mxu0 %v654_v1 }
  0x62   :  { %487 = vmatpush3.bf16.msra.mxu1 %v486_v21 }
  0x63   :  { %488 = vmatprep.subr.bf16.mxu1 %v654_v1  ;;  %508 = vmatpush3.bf16.msra.mxu0 %v507_v42 }
  0x64   :  { %509 = vmatprep.subr.bf16.mxu0 %v654_v1 }
  0x66   :  { %490 = vmatpush3.bf16.msra.mxu1 %v489_v24 }
  0x67   :  { %491 = vmatprep.subr.bf16.mxu1 %v654_v1  ;;  %511 = vmatpush3.bf16.msra.mxu0 %v510_v45 }
  0x68   :  { %512 = vmatprep.subr.bf16.mxu0 %v654_v1 }
  0x6a   :  { %493 = vmatpush3.bf16.msra.mxu1 %v492_v27 }
  0x6b   :  { %514 = vmatpush3.bf16.msra.mxu0 %v513_v48 }
  0x6c   :  { %515 = vmatprep.subr.bf16.mxu0 %v654_v1 }
  0x6f   :  { %517 = vmatpush3.bf16.msra.mxu0 %v516_v56 }
 0x120   :  { %v149_v50 = vpop.f32.mrb[0].mxu0 }
 0x121   :  { %v150_v51 = vadd.f32 %v355_v49, %v149_v50  ;;  %v399_v52 = vpop.f32.mrb[1].mxu0 }
 0x123   :  { %v153_v53 = vmax.f32 %v150_v51, 0.0 }
 0x125   :  { %433 = vmatmul.mubr.f32.vlgmr.msra.gmra.mrb[0].mxu1 %v153_v53 }
 0x1f8   :  { %v241_v58 = vpop.f32.mrb[0].mxu1 }
 0x1f9   :  { %v242_v59 = vadd.f32 %v357_v57, %v241_v58  ;;  %v434_v60 = vpop.f32.mrb[1].mxu1 }
 0x1fb   :  { %v245_v61 = vmax.f32 %v242_v59, 0.0 }
 0x1fd   :  { %468 = vmatmul.mubr.f32.vlgmr.msra.gmra.mrb[2].mxu0 %v245_v61 }
 0x2d0   :  { %v333_v63 = vpop.f32.mrb[2].mxu0 }
 0x2d1   :  { %v334_v0 = vadd.f32 %v358_v62, %v333_v63  ;;  %v469_v1 = vpop.f32.mrb[3].mxu0 }
 0x2d3   :  { %337 = vst [vmem:[#allocation10] sm:$0x3] %v334_v0 }
 0x2d4   :  { %627 = shalt.err (!%p624_p8)
}
 0x2d5   :  { %s628_s25 = scalar_lea.hbm %s779_s5, 32 }
 0x2d6   :  { %p629_p9 = scmp.ne.s32.totalorder %s779_s5, %s628_s25  ;;  %p632_p10 = scmp.lt.u32.totalorder %s628_s25, %s779_s5 }
 0x2d8   :  { %p634_p11 = pnand %p632_p10, %p629_p9 }
 0x2da   :  { %637 = shalt.err (!%p634_p11)
}
 0x2db   :  { %347 = dma.vmem_to_hbm [thread:$0]  %s345_s20, 32, %s779_s5, [#allocation4]  }
 0x2dc   :  { %644 = dma.done.wait [#allocation4], 32  }
 0x2dd   :  { %645 = vsyncadd [#allocation4], 4294967264 }
 0x2de   :  { %351 = vsyncpa [#allocation3], 1 }
 0x2df   :  { %352 = vsyncpa [#allocation6], 1 }
 0x2e0   :  { %353 = vsyncpa [#allocation9], 1 }
 0x2e1   :  { %354 = vsyncpa [#allocation4], 1 }

</bundles_post_ra>
